<compile_context>
chip_gen: v6e
topology: v6e:2x2x1
jax: 0.10.0
libtpu: 0.0.40
codegen_flags: <defaults>
</compile_context>

<pallas_src>
import numpy as np
import jax
import jax.numpy as jnp
from jax import lax
from jax.experimental import pallas as pl
from jax.experimental.pallas import tpu as pltpu


def _make_net_kernel(T, B, H):
    """Fused embedding-gather + LSTM + Linear + log_softmax kernel (static T, B, H)."""

    def kernel(ids_ref, emb_ref, wih_ref, whh_ref, b_ref, wfc_ref, bfc_ref, out_ref):
        # ids_ref: (T*B,)  int32 SMEM, time-major flat token ids (row = t*B + b)
        # emb_ref: (V, E)  f32 VMEM embedding table
        # wih_ref: (E, 4H) whh_ref: (H, 4H)  b_ref: (1, 4H)  (b_ih + b_hh)
        # wfc_ref: (H, CP) zero-padded FC weight, bfc_ref: (1, CP) bias with
        #          -1e30 in the padded lanes (CP = 128, lane-dense)
        # out_ref: (B*T, CP) log-probs, batch-major rows (row = b*T + t)

        # ---- hoisted per-lane constants (PyTorch gate order: i, f, g, o) ----
        lane_r = lax.broadcasted_iota(jnp.int32, (1, 4 * H), 1)
        g_row = (lane_r >= 2 * H) & (lane_r < 3 * H)
        # sigmoid(x) = 0.5 + 0.5*tanh(x/2): scale i/f/o columns by 0.5, keep g.
        col_scale = jnp.where(g_row, 1.0, 0.5).astype(jnp.float32)       # (1, 4H)

        lane_b = lax.broadcasted_iota(jnp.int32, (B, 4 * H), 1)
        g_sel = (lane_b >= 2 * H) & (lane_b < 3 * H)
        a_aff = jnp.where(g_sel, 1.0, 0.5).astype(jnp.float32)           # (B, 4H)
        c_aff = jnp.where(g_sel, 0.0, 0.5).astype(jnp.float32)           # (B, 4H)

        # Pre-scale the gate weights once (hoisted, off the critical path).
        wih_s = wih_ref[...] * col_scale                                  # (E, 4H)
        whh_s = whh_ref[...] * col_scale                                  # (H, 4H)
        b_s = b_ref[...] * col_scale                                      # (1, 4H)

        # ---- fused embedding gather, time-major rows (row = t*B + b) ----
        x = jnp.concatenate(
            [emb_ref[pl.ds(ids_ref[r], 1), :] for r in range(T * B)], axis=0)  # (T*B, E)

        # ---- input projection for ALL timesteps at once (non-recurrent) ----
        gx = jnp.dot(x, wih_s, preferred_element_type=jnp.float32) + b_s       # (T*B, 4H)

        # ---- serial recurrence, fully unrolled; h/c state vreg-resident ----
        h = jnp.zeros((B, H), jnp.float32)
        c = jnp.zeros((B, H), jnp.float32)
        hs = []
        for t in range(T):
            gates = gx[t * B:(t + 1) * B, :] + jnp.dot(
                h, whh_s, preferred_element_type=jnp.float32)             # (B, 4H)
            # Single EUP pass for all four gates, then a hoisted VPU affine.
            act = a_aff * jnp.tanh(gates) + c_aff
            i_g = act[:, 0 * H:1 * H]
            f_g = act[:, 1 * H:2 * H]
            g_g = act[:, 2 * H:3 * H]
            o_g = act[:, 3 * H:4 * H]
            c = f_g * c + i_g * g_g
            h = o_g * jnp.tanh(c)
            hs.append(h)
            # TODO(synk): if profiling shows relayout-bound slicing, replace the
            # four 32-lane slices with two pltpu.roll ops + masked FMAs.

        # ---- reorder to PyTorch's batch-major row order (b*T + t) as values ----
        rows = [hs[t][bb:bb + 1, :] for bb in range(B) for t in range(T)]
        hs_bm = jnp.concatenate(rows, axis=0)                              # (B*T, H)

        # ---- fused Linear + log_softmax over lane-dense padded logits ----
        logits = jnp.dot(hs_bm, wfc_ref[...],
                         preferred_element_type=jnp.float32) + bfc_ref[...]  # (B*T, CP)
        m = jnp.max(logits, axis=1, keepdims=True)
        z = logits - m
        lse = jnp.log(jnp.sum(jnp.exp(z), axis=1, keepdims=True))
        out_ref[...] = z - lse                                             # one unmasked store

    return kernel


def net_forward(tokens, params):
    """tokens: (B, T) int32. Returns (B*T, number_of_tags) f32 log-probs
    in PyTorch's s.view(-1, C) row order (row = b*T + t)."""
    emb, wih, whh, b, wfc, bfc = params
    B, T = tokens.shape
    H = whh.shape[0]
    C = wfc.shape[1]
    CP = 128 * pl.cdiv(C, 128)                      # lane-dense logits width

    # Only the tiny int token-id array is transposed (time-major flat order).
    ids = jnp.transpose(tokens).reshape(T * B).astype(jnp.int32)

    # Lane-dense FC weights: zero-pad columns; padded bias lanes get -1e30 so
    # the in-kernel log_softmax ignores them.
    wfc_p = jnp.zeros((H, CP), jnp.float32).at[:, :C].set(wfc)
    bfc_p = jnp.full((1, CP), -1e30, jnp.float32).at[:, :C].set(bfc)

    kernel = _make_net_kernel(T, B, H)
    out_p = pl.pallas_call(
        kernel,
        out_shape=jax.ShapeDtypeStruct((B * T, CP), jnp.float32),
        in_specs=[
            pl.BlockSpec(memory_space=pltpu.MemorySpace.SMEM),   # token ids
            pl.BlockSpec(memory_space=pltpu.MemorySpace.VMEM),   # embedding table
            pl.BlockSpec(memory_space=pltpu.MemorySpace.VMEM),   # W_ih  (E, 4H)
            pl.BlockSpec(memory_space=pltpu.MemorySpace.VMEM),   # W_hh  (H, 4H)
            pl.BlockSpec(memory_space=pltpu.MemorySpace.VMEM),   # b     (1, 4H)
            pl.BlockSpec(memory_space=pltpu.MemorySpace.VMEM),   # W_fc  (H, CP)
            pl.BlockSpec(memory_space=pltpu.MemorySpace.VMEM),   # b_fc  (1, CP)
        ],
        out_specs=pl.BlockSpec(memory_space=pltpu.MemorySpace.VMEM),
    )(ids, emb.astype(jnp.float32), wih, whh, b, wfc_p, bfc_p)

    return out_p[:, :C]


def reference_forward(tokens, params):
    """Pure-JAX reference reproducing PyTorch semantics."""
    emb, wih, whh, b, wfc, bfc = params
    x = jnp.take(emb, tokens, axis=0)          # (B, T, E)
    B, T, _ = x.shape
    H = whh.shape[0]

    def step(carry, x_t):
        h, c = carry
        gates = x_t @ wih + h @ whh + b[0]
        i = jax.nn.sigmoid(gates[:, 0 * H:1 * H])
        f = jax.nn.sigmoid(gates[:, 1 * H:2 * H])
        g = jnp.tanh(gates[:, 2 * H:3 * H])
        o = jax.nn.sigmoid(gates[:, 3 * H:4 * H])
        c = f * c + i * g
        h = o * jnp.tanh(c)
        return (h, c), h

    (_, _), hs = lax.scan(step,
                          (jnp.zeros((B, H), jnp.float32), jnp.zeros((B, H), jnp.float32)),
                          jnp.transpose(x, (1, 0, 2)))
    hs = jnp.transpose(hs, (1, 0, 2)).reshape(B * T, H)
    logits = hs @ wfc + bfc[0]
    return jax.nn.log_softmax(logits, axis=1)


def make_params(key, vocab_size, embedding_dim, lstm_hidden_dim, number_of_tags):
    """Deterministic synthetic parameters matching nn.Embedding / nn.LSTM / nn.Linear shapes.
    LSTM weights are pre-transposed to (in, 4H) / (H, 4H); b = b_ih + b_hh combined."""
    ks = jax.random.split(key, 6)
    scale = 0.1
    emb = scale * jax.random.normal(ks[0], (vocab_size, embedding_dim), jnp.float32)
    wih = scale * jax.random.normal(ks[1], (embedding_dim, 4 * lstm_hidden_dim), jnp.float32)
    whh = scale * jax.random.normal(ks[2], (lstm_hidden_dim, 4 * lstm_hidden_dim), jnp.float32)
    b = scale * jax.random.normal(ks[3], (1, 4 * lstm_hidden_dim), jnp.float32)
    wfc = scale * jax.random.normal(ks[4], (lstm_hidden_dim, number_of_tags), jnp.float32)
    bfc = scale * jax.random.normal(ks[5], (1, number_of_tags), jnp.float32)
    return emb, wih, whh, b, wfc, bfc


if __name__ == "__main__":
    # Small hyperparameters consistent with the module's __init__
    vocab_size = 40
    embedding_dim = 32
    lstm_hidden_dim = 32
    number_of_tags = 5
    B, T = 2, 8

    key = jax.random.PRNGKey(0)
    k_tok, k_par = jax.random.split(key)
    tokens = jax.random.randint(k_tok, (B, T), 0, vocab_size, dtype=jnp.int32)
    params = make_params(k_par, vocab_size, embedding_dim, lstm_hidden_dim, number_of_tags)

    out = net_forward(tokens, params)
    out = jax.block_until_ready(out)

    ref = jax.block_until_ready(reference_forward(tokens, params))
    np.testing.assert_allclose(np.asarray(out), np.asarray(ref), rtol=1e-4, atol=1e-4)
    assert out.shape == (B * T, number_of_tags)

    print("KERNEL_OK")
</pallas_src>

<mosaic_0001>
module attributes {stable_mosaic.version = 11 : i64} {
  func.func @kernel(%arg0: memref<16xi32, #tpu.memory_space<smem>>, %arg1: memref<40x32xf32, #tpu.memory_space<vmem>>, %arg2: memref<32x128xf32, #tpu.memory_space<vmem>>, %arg3: memref<32x128xf32, #tpu.memory_space<vmem>>, %arg4: memref<1x128xf32, #tpu.memory_space<vmem>>, %arg5: memref<32x128xf32, #tpu.memory_space<vmem>>, %arg6: memref<1x128xf32, #tpu.memory_space<vmem>>, %arg7: memref<16x128xf32, #tpu.memory_space<vmem>>) attributes {dimension_semantics = [], scalar_prefetch = 0 : i64, scratch_operands = 0 : i64, tpu.core_type = #tpu.core_type<tc>} {
    %0 = tpu.iota {dimensions = array<i32: 1>} : vector<1x128xi32>
    %c64_i32 = arith.constant 64 : i32
    %1 = vector.broadcast %c64_i32 : i32 to vector<1x128xi32>
    %2 = arith.cmpi sge, %0, %1 : vector<1x128xi32>
    %c96_i32 = arith.constant 96 : i32
    %3 = vector.broadcast %c96_i32 : i32 to vector<1x128xi32>
    %4 = arith.cmpi slt, %0, %3 : vector<1x128xi32>
    %5 = arith.andi %2, %4 : vector<1x128xi1>
    %cst = arith.constant 1.000000e+00 : f32
    %cst_0 = arith.constant 5.000000e-01 : f32
    %6 = vector.broadcast %cst : f32 to vector<1x128xf32>
    %7 = vector.broadcast %cst_0 : f32 to vector<1x128xf32>
    %8 = arith.select %5, %6, %7 : vector<1x128xi1>, vector<1x128xf32>
    %9 = tpu.iota {dimensions = array<i32: 1>} : vector<2x128xi32>
    %c64_i32_1 = arith.constant 64 : i32
    %10 = vector.broadcast %c64_i32_1 : i32 to vector<2x128xi32>
    %11 = arith.cmpi sge, %9, %10 : vector<2x128xi32>
    %c96_i32_2 = arith.constant 96 : i32
    %12 = vector.broadcast %c96_i32_2 : i32 to vector<2x128xi32>
    %13 = arith.cmpi slt, %9, %12 : vector<2x128xi32>
    %14 = arith.andi %11, %13 : vector<2x128xi1>
    %cst_3 = arith.constant 1.000000e+00 : f32
    %cst_4 = arith.constant 5.000000e-01 : f32
    %15 = vector.broadcast %cst_3 : f32 to vector<2x128xf32>
    %16 = vector.broadcast %cst_4 : f32 to vector<2x128xf32>
    %17 = arith.select %14, %15, %16 : vector<2x128xi1>, vector<2x128xf32>
    %cst_5 = arith.constant 0.000000e+00 : f32
    %cst_6 = arith.constant 5.000000e-01 : f32
    %18 = vector.broadcast %cst_5 : f32 to vector<2x128xf32>
    %19 = vector.broadcast %cst_6 : f32 to vector<2x128xf32>
    %20 = arith.select %14, %18, %19 : vector<2x128xi1>, vector<2x128xf32>
    %c0 = arith.constant 0 : index
    %c0_7 = arith.constant 0 : index
    %21 = vector.load %arg2[%c0, %c0_7] : memref<32x128xf32, #tpu.memory_space<vmem>>, vector<32x128xf32>
    %22 = vector.broadcast %8 : vector<1x128xf32> to vector<32x128xf32>
    %23 = arith.mulf %21, %22 : vector<32x128xf32>
    %c0_8 = arith.constant 0 : index
    %c0_9 = arith.constant 0 : index
    %24 = vector.load %arg3[%c0_8, %c0_9] : memref<32x128xf32, #tpu.memory_space<vmem>>, vector<32x128xf32>
    %25 = vector.broadcast %8 : vector<1x128xf32> to vector<32x128xf32>
    %26 = arith.mulf %24, %25 : vector<32x128xf32>
    %c0_10 = arith.constant 0 : index
    %c0_11 = arith.constant 0 : index
    %27 = vector.load %arg4[%c0_10, %c0_11] : memref<1x128xf32, #tpu.memory_space<vmem>>, vector<1x128xf32>
    %28 = arith.mulf %27, %8 : vector<1x128xf32>
    %c0_12 = arith.constant 0 : index
    %29 = memref.load %arg0[%c0_12] : memref<16xi32, #tpu.memory_space<smem>>
    %30 = arith.index_cast %29 : i32 to index
    %c0_13 = arith.constant 0 : index
    %31 = vector.load %arg1[%30, %c0_13] : memref<40x32xf32, #tpu.memory_space<vmem>>, vector<1x32xf32>
    %c1 = arith.constant 1 : index
    %32 = memref.load %arg0[%c1] : memref<16xi32, #tpu.memory_space<smem>>
    %33 = arith.index_cast %32 : i32 to index
    %c0_14 = arith.constant 0 : index
    %34 = vector.load %arg1[%33, %c0_14] : memref<40x32xf32, #tpu.memory_space<vmem>>, vector<1x32xf32>
    %c2 = arith.constant 2 : index
    %35 = memref.load %arg0[%c2] : memref<16xi32, #tpu.memory_space<smem>>
    %36 = arith.index_cast %35 : i32 to index
    %c0_15 = arith.constant 0 : index
    %37 = vector.load %arg1[%36, %c0_15] : memref<40x32xf32, #tpu.memory_space<vmem>>, vector<1x32xf32>
    %c3 = arith.constant 3 : index
    %38 = memref.load %arg0[%c3] : memref<16xi32, #tpu.memory_space<smem>>
    %39 = arith.index_cast %38 : i32 to index
    %c0_16 = arith.constant 0 : index
    %40 = vector.load %arg1[%39, %c0_16] : memref<40x32xf32, #tpu.memory_space<vmem>>, vector<1x32xf32>
    %c4 = arith.constant 4 : index
    %41 = memref.load %arg0[%c4] : memref<16xi32, #tpu.memory_space<smem>>
    %42 = arith.index_cast %41 : i32 to index
    %c0_17 = arith.constant 0 : index
    %43 = vector.load %arg1[%42, %c0_17] : memref<40x32xf32, #tpu.memory_space<vmem>>, vector<1x32xf32>
    %c5 = arith.constant 5 : index
    %44 = memref.load %arg0[%c5] : memref<16xi32, #tpu.memory_space<smem>>
    %45 = arith.index_cast %44 : i32 to index
    %c0_18 = arith.constant 0 : index
    %46 = vector.load %arg1[%45, %c0_18] : memref<40x32xf32, #tpu.memory_space<vmem>>, vector<1x32xf32>
    %c6 = arith.constant 6 : index
    %47 = memref.load %arg0[%c6] : memref<16xi32, #tpu.memory_space<smem>>
    %48 = arith.index_cast %47 : i32 to index
    %c0_19 = arith.constant 0 : index
    %49 = vector.load %arg1[%48, %c0_19] : memref<40x32xf32, #tpu.memory_space<vmem>>, vector<1x32xf32>
    %c7 = arith.constant 7 : index
    %50 = memref.load %arg0[%c7] : memref<16xi32, #tpu.memory_space<smem>>
    %51 = arith.index_cast %50 : i32 to index
    %c0_20 = arith.constant 0 : index
    %52 = vector.load %arg1[%51, %c0_20] : memref<40x32xf32, #tpu.memory_space<vmem>>, vector<1x32xf32>
    %c8 = arith.constant 8 : index
    %53 = memref.load %arg0[%c8] : memref<16xi32, #tpu.memory_space<smem>>
    %54 = arith.index_cast %53 : i32 to index
    %c0_21 = arith.constant 0 : index
    %55 = vector.load %arg1[%54, %c0_21] : memref<40x32xf32, #tpu.memory_space<vmem>>, vector<1x32xf32>
    %c9 = arith.constant 9 : index
    %56 = memref.load %arg0[%c9] : memref<16xi32, #tpu.memory_space<smem>>
    %57 = arith.index_cast %56 : i32 to index
    %c0_22 = arith.constant 0 : index
    %58 = vector.load %arg1[%57, %c0_22] : memref<40x32xf32, #tpu.memory_space<vmem>>, vector<1x32xf32>
    %c10 = arith.constant 10 : index
    %59 = memref.load %arg0[%c10] : memref<16xi32, #tpu.memory_space<smem>>
    %60 = arith.index_cast %59 : i32 to index
    %c0_23 = arith.constant 0 : index
    %61 = vector.load %arg1[%60, %c0_23] : memref<40x32xf32, #tpu.memory_space<vmem>>, vector<1x32xf32>
    %c11 = arith.constant 11 : index
    %62 = memref.load %arg0[%c11] : memref<16xi32, #tpu.memory_space<smem>>
    %63 = arith.index_cast %62 : i32 to index
    %c0_24 = arith.constant 0 : index
    %64 = vector.load %arg1[%63, %c0_24] : memref<40x32xf32, #tpu.memory_space<vmem>>, vector<1x32xf32>
    %c12 = arith.constant 12 : index
    %65 = memref.load %arg0[%c12] : memref<16xi32, #tpu.memory_space<smem>>
    %66 = arith.index_cast %65 : i32 to index
    %c0_25 = arith.constant 0 : index
    %67 = vector.load %arg1[%66, %c0_25] : memref<40x32xf32, #tpu.memory_space<vmem>>, vector<1x32xf32>
    %c13 = arith.constant 13 : index
    %68 = memref.load %arg0[%c13] : memref<16xi32, #tpu.memory_space<smem>>
    %69 = arith.index_cast %68 : i32 to index
    %c0_26 = arith.constant 0 : index
    %70 = vector.load %arg1[%69, %c0_26] : memref<40x32xf32, #tpu.memory_space<vmem>>, vector<1x32xf32>
    %c14 = arith.constant 14 : index
    %71 = memref.load %arg0[%c14] : memref<16xi32, #tpu.memory_space<smem>>
    %72 = arith.index_cast %71 : i32 to index
    %c0_27 = arith.constant 0 : index
    %73 = vector.load %arg1[%72, %c0_27] : memref<40x32xf32, #tpu.memory_space<vmem>>, vector<1x32xf32>
    %c15 = arith.constant 15 : index
    %74 = memref.load %arg0[%c15] : memref<16xi32, #tpu.memory_space<smem>>
    %75 = arith.index_cast %74 : i32 to index
    %c0_28 = arith.constant 0 : index
    %76 = vector.load %arg1[%75, %c0_28] : memref<40x32xf32, #tpu.memory_space<vmem>>, vector<1x32xf32>
    %77 = tpu.concatenate %31, %34, %37, %40, %43, %46, %49, %52, %55, %58, %61, %64, %67, %70, %73, %76 in 0 : vector<1x32xf32>, vector<1x32xf32>, vector<1x32xf32>, vector<1x32xf32>, vector<1x32xf32>, vector<1x32xf32>, vector<1x32xf32>, vector<1x32xf32>, vector<1x32xf32>, vector<1x32xf32>, vector<1x32xf32>, vector<1x32xf32>, vector<1x32xf32>, vector<1x32xf32>, vector<1x32xf32>, vector<1x32xf32> -> vector<16x32xf32>
    %cst_29 = arith.constant dense<0.000000e+00> : vector<16x128xf32>
    %78 = tpu.matmul %77, %23, %cst_29 {dimension_numbers = #tpu.dot_dimension_numbers<[1], [0], [0], [1], [0, 0, 1, 1], [], []>} : vector<16x32xf32>, vector<32x128xf32>, vector<16x128xf32> -> vector<16x128xf32>
    %79 = vector.broadcast %28 : vector<1x128xf32> to vector<16x128xf32>
    %80 = arith.addf %78, %79 : vector<16x128xf32>
    %cst_30 = arith.constant 0.000000e+00 : f32
    %81 = vector.broadcast %cst_30 : f32 to vector<2x32xf32>
    %cst_31 = arith.constant 0.000000e+00 : f32
    %82 = vector.broadcast %cst_31 : f32 to vector<2x32xf32>
    %83 = vector.extract_strided_slice %80 {offsets = [0, 0], sizes = [2, 128], strides = [1, 1]} : vector<16x128xf32> to vector<2x128xf32>
    %cst_32 = arith.constant dense<0.000000e+00> : vector<2x128xf32>
    %84 = tpu.matmul %81, %26, %cst_32 {dimension_numbers = #tpu.dot_dimension_numbers<[1], [0], [0], [1], [0, 0, 1, 1], [], []>} : vector<2x32xf32>, vector<32x128xf32>, vector<2x128xf32> -> vector<2x128xf32>
    %85 = arith.addf %83, %84 : vector<2x128xf32>
    %86 = math.tanh %85 : vector<2x128xf32>
    %87 = arith.mulf %17, %86 : vector<2x128xf32>
    %88 = arith.addf %87, %20 : vector<2x128xf32>
    %89 = vector.extract_strided_slice %88 {offsets = [0, 0], sizes = [2, 32], strides = [1, 1]} : vector<2x128xf32> to vector<2x32xf32>
    %90 = vector.extract_strided_slice %88 {offsets = [0, 32], sizes = [2, 32], strides = [1, 1]} : vector<2x128xf32> to vector<2x32xf32>
    %91 = vector.extract_strided_slice %88 {offsets = [0, 64], sizes = [2, 32], strides = [1, 1]} : vector<2x128xf32> to vector<2x32xf32>
    %92 = vector.extract_strided_slice %88 {offsets = [0, 96], sizes = [2, 32], strides = [1, 1]} : vector<2x128xf32> to vector<2x32xf32>
    %93 = arith.mulf %90, %82 : vector<2x32xf32>
    %94 = arith.mulf %89, %91 : vector<2x32xf32>
    %95 = arith.addf %93, %94 : vector<2x32xf32>
    %96 = math.tanh %95 : vector<2x32xf32>
    %97 = arith.mulf %92, %96 : vector<2x32xf32>
    %98 = vector.extract_strided_slice %80 {offsets = [2, 0], sizes = [2, 128], strides = [1, 1]} : vector<16x128xf32> to vector<2x128xf32>
    %cst_33 = arith.constant dense<0.000000e+00> : vector<2x128xf32>
    %99 = tpu.matmul %97, %26, %cst_33 {dimension_numbers = #tpu.dot_dimension_numbers<[1], [0], [0], [1], [0, 0, 1, 1], [], []>} : vector<2x32xf32>, vector<32x128xf32>, vector<2x128xf32> -> vector<2x128xf32>
    %100 = arith.addf %98, %99 : vector<2x128xf32>
    %101 = math.tanh %100 : vector<2x128xf32>
    %102 = arith.mulf %17, %101 : vector<2x128xf32>
    %103 = arith.addf %102, %20 : vector<2x128xf32>
    %104 = vector.extract_strided_slice %103 {offsets = [0, 0], sizes = [2, 32], strides = [1, 1]} : vector<2x128xf32> to vector<2x32xf32>
    %105 = vector.extract_strided_slice %103 {offsets = [0, 32], sizes = [2, 32], strides = [1, 1]} : vector<2x128xf32> to vector<2x32xf32>
    %106 = vector.extract_strided_slice %103 {offsets = [0, 64], sizes = [2, 32], strides = [1, 1]} : vector<2x128xf32> to vector<2x32xf32>
    %107 = vector.extract_strided_slice %103 {offsets = [0, 96], sizes = [2, 32], strides = [1, 1]} : vector<2x128xf32> to vector<2x32xf32>
    %108 = arith.mulf %105, %95 : vector<2x32xf32>
    %109 = arith.mulf %104, %106 : vector<2x32xf32>
    %110 = arith.addf %108, %109 : vector<2x32xf32>
    %111 = math.tanh %110 : vector<2x32xf32>
    %112 = arith.mulf %107, %111 : vector<2x32xf32>
    %113 = vector.extract_strided_slice %80 {offsets = [4, 0], sizes = [2, 128], strides = [1, 1]} : vector<16x128xf32> to vector<2x128xf32>
    %cst_34 = arith.constant dense<0.000000e+00> : vector<2x128xf32>
    %114 = tpu.matmul %112, %26, %cst_34 {dimension_numbers = #tpu.dot_dimension_numbers<[1], [0], [0], [1], [0, 0, 1, 1], [], []>} : vector<2x32xf32>, vector<32x128xf32>, vector<2x128xf32> -> vector<2x128xf32>
    %115 = arith.addf %113, %114 : vector<2x128xf32>
    %116 = math.tanh %115 : vector<2x128xf32>
    %117 = arith.mulf %17, %116 : vector<2x128xf32>
    %118 = arith.addf %117, %20 : vector<2x128xf32>
    %119 = vector.extract_strided_slice %118 {offsets = [0, 0], sizes = [2, 32], strides = [1, 1]} : vector<2x128xf32> to vector<2x32xf32>
    %120 = vector.extract_strided_slice %118 {offsets = [0, 32], sizes = [2, 32], strides = [1, 1]} : vector<2x128xf32> to vector<2x32xf32>
    %121 = vector.extract_strided_slice %118 {offsets = [0, 64], sizes = [2, 32], strides = [1, 1]} : vector<2x128xf32> to vector<2x32xf32>
    %122 = vector.extract_strided_slice %118 {offsets = [0, 96], sizes = [2, 32], strides = [1, 1]} : vector<2x128xf32> to vector<2x32xf32>
    %123 = arith.mulf %120, %110 : vector<2x32xf32>
    %124 = arith.mulf %119, %121 : vector<2x32xf32>
    %125 = arith.addf %123, %124 : vector<2x32xf32>
    %126 = math.tanh %125 : vector<2x32xf32>
    %127 = arith.mulf %122, %126 : vector<2x32xf32>
    %128 = vector.extract_strided_slice %80 {offsets = [6, 0], sizes = [2, 128], strides = [1, 1]} : vector<16x128xf32> to vector<2x128xf32>
    %cst_35 = arith.constant dense<0.000000e+00> : vector<2x128xf32>
    %129 = tpu.matmul %127, %26, %cst_35 {dimension_numbers = #tpu.dot_dimension_numbers<[1], [0], [0], [1], [0, 0, 1, 1], [], []>} : vector<2x32xf32>, vector<32x128xf32>, vector<2x128xf32> -> vector<2x128xf32>
    %130 = arith.addf %128, %129 : vector<2x128xf32>
    %131 = math.tanh %130 : vector<2x128xf32>
    %132 = arith.mulf %17, %131 : vector<2x128xf32>
    %133 = arith.addf %132, %20 : vector<2x128xf32>
    %134 = vector.extract_strided_slice %133 {offsets = [0, 0], sizes = [2, 32], strides = [1, 1]} : vector<2x128xf32> to vector<2x32xf32>
    %135 = vector.extract_strided_slice %133 {offsets = [0, 32], sizes = [2, 32], strides = [1, 1]} : vector<2x128xf32> to vector<2x32xf32>
    %136 = vector.extract_strided_slice %133 {offsets = [0, 64], sizes = [2, 32], strides = [1, 1]} : vector<2x128xf32> to vector<2x32xf32>
    %137 = vector.extract_strided_slice %133 {offsets = [0, 96], sizes = [2, 32], strides = [1, 1]} : vector<2x128xf32> to vector<2x32xf32>
    %138 = arith.mulf %135, %125 : vector<2x32xf32>
    %139 = arith.mulf %134, %136 : vector<2x32xf32>
    %140 = arith.addf %138, %139 : vector<2x32xf32>
    %141 = math.tanh %140 : vector<2x32xf32>
    %142 = arith.mulf %137, %141 : vector<2x32xf32>
    %143 = vector.extract_strided_slice %80 {offsets = [8, 0], sizes = [2, 128], strides = [1, 1]} : vector<16x128xf32> to vector<2x128xf32>
    %cst_36 = arith.constant dense<0.000000e+00> : vector<2x128xf32>
    %144 = tpu.matmul %142, %26, %cst_36 {dimension_numbers = #tpu.dot_dimension_numbers<[1], [0], [0], [1], [0, 0, 1, 1], [], []>} : vector<2x32xf32>, vector<32x128xf32>, vector<2x128xf32> -> vector<2x128xf32>
    %145 = arith.addf %143, %144 : vector<2x128xf32>
    %146 = math.tanh %145 : vector<2x128xf32>
    %147 = arith.mulf %17, %146 : vector<2x128xf32>
    %148 = arith.addf %147, %20 : vector<2x128xf32>
    %149 = vector.extract_strided_slice %148 {offsets = [0, 0], sizes = [2, 32], strides = [1, 1]} : vector<2x128xf32> to vector<2x32xf32>
    %150 = vector.extract_strided_slice %148 {offsets = [0, 32], sizes = [2, 32], strides = [1, 1]} : vector<2x128xf32> to vector<2x32xf32>
    %151 = vector.extract_strided_slice %148 {offsets = [0, 64], sizes = [2, 32], strides = [1, 1]} : vector<2x128xf32> to vector<2x32xf32>
    %152 = vector.extract_strided_slice %148 {offsets = [0, 96], sizes = [2, 32], strides = [1, 1]} : vector<2x128xf32> to vector<2x32xf32>
    %153 = arith.mulf %150, %140 : vector<2x32xf32>
    %154 = arith.mulf %149, %151 : vector<2x32xf32>
    %155 = arith.addf %153, %154 : vector<2x32xf32>
    %156 = math.tanh %155 : vector<2x32xf32>
    %157 = arith.mulf %152, %156 : vector<2x32xf32>
    %158 = vector.extract_strided_slice %80 {offsets = [10, 0], sizes = [2, 128], strides = [1, 1]} : vector<16x128xf32> to vector<2x128xf32>
    %cst_37 = arith.constant dense<0.000000e+00> : vector<2x128xf32>
    %159 = tpu.matmul %157, %26, %cst_37 {dimension_numbers = #tpu.dot_dimension_numbers<[1], [0], [0], [1], [0, 0, 1, 1], [], []>} : vector<2x32xf32>, vector<32x128xf32>, vector<2x128xf32> -> vector<2x128xf32>
    %160 = arith.addf %158, %159 : vector<2x128xf32>
    %161 = math.tanh %160 : vector<2x128xf32>
    %162 = arith.mulf %17, %161 : vector<2x128xf32>
    %163 = arith.addf %162, %20 : vector<2x128xf32>
    %164 = vector.extract_strided_slice %163 {offsets = [0, 0], sizes = [2, 32], strides = [1, 1]} : vector<2x128xf32> to vector<2x32xf32>
    %165 = vector.extract_strided_slice %163 {offsets = [0, 32], sizes = [2, 32], strides = [1, 1]} : vector<2x128xf32> to vector<2x32xf32>
    %166 = vector.extract_strided_slice %163 {offsets = [0, 64], sizes = [2, 32], strides = [1, 1]} : vector<2x128xf32> to vector<2x32xf32>
    %167 = vector.extract_strided_slice %163 {offsets = [0, 96], sizes = [2, 32], strides = [1, 1]} : vector<2x128xf32> to vector<2x32xf32>
    %168 = arith.mulf %165, %155 : vector<2x32xf32>
    %169 = arith.mulf %164, %166 : vector<2x32xf32>
    %170 = arith.addf %168, %169 : vector<2x32xf32>
    %171 = math.tanh %170 : vector<2x32xf32>
    %172 = arith.mulf %167, %171 : vector<2x32xf32>
    %173 = vector.extract_strided_slice %80 {offsets = [12, 0], sizes = [2, 128], strides = [1, 1]} : vector<16x128xf32> to vector<2x128xf32>
    %cst_38 = arith.constant dense<0.000000e+00> : vector<2x128xf32>
    %174 = tpu.matmul %172, %26, %cst_38 {dimension_numbers = #tpu.dot_dimension_numbers<[1], [0], [0], [1], [0, 0, 1, 1], [], []>} : vector<2x32xf32>, vector<32x128xf32>, vector<2x128xf32> -> vector<2x128xf32>
    %175 = arith.addf %173, %174 : vector<2x128xf32>
    %176 = math.tanh %175 : vector<2x128xf32>
    %177 = arith.mulf %17, %176 : vector<2x128xf32>
    %178 = arith.addf %177, %20 : vector<2x128xf32>
    %179 = vector.extract_strided_slice %178 {offsets = [0, 0], sizes = [2, 32], strides = [1, 1]} : vector<2x128xf32> to vector<2x32xf32>
    %180 = vector.extract_strided_slice %178 {offsets = [0, 32], sizes = [2, 32], strides = [1, 1]} : vector<2x128xf32> to vector<2x32xf32>
    %181 = vector.extract_strided_slice %178 {offsets = [0, 64], sizes = [2, 32], strides = [1, 1]} : vector<2x128xf32> to vector<2x32xf32>
    %182 = vector.extract_strided_slice %178 {offsets = [0, 96], sizes = [2, 32], strides = [1, 1]} : vector<2x128xf32> to vector<2x32xf32>
    %183 = arith.mulf %180, %170 : vector<2x32xf32>
    %184 = arith.mulf %179, %181 : vector<2x32xf32>
    %185 = arith.addf %183, %184 : vector<2x32xf32>
    %186 = math.tanh %185 : vector<2x32xf32>
    %187 = arith.mulf %182, %186 : vector<2x32xf32>
    %188 = vector.extract_strided_slice %80 {offsets = [14, 0], sizes = [2, 128], strides = [1, 1]} : vector<16x128xf32> to vector<2x128xf32>
    %cst_39 = arith.constant dense<0.000000e+00> : vector<2x128xf32>
    %189 = tpu.matmul %187, %26, %cst_39 {dimension_numbers = #tpu.dot_dimension_numbers<[1], [0], [0], [1], [0, 0, 1, 1], [], []>} : vector<2x32xf32>, vector<32x128xf32>, vector<2x128xf32> -> vector<2x128xf32>
    %190 = arith.addf %188, %189 : vector<2x128xf32>
    %191 = math.tanh %190 : vector<2x128xf32>
    %192 = arith.mulf %17, %191 : vector<2x128xf32>
    %193 = arith.addf %192, %20 : vector<2x128xf32>
    %194 = vector.extract_strided_slice %193 {offsets = [0, 0], sizes = [2, 32], strides = [1, 1]} : vector<2x128xf32> to vector<2x32xf32>
    %195 = vector.extract_strided_slice %193 {offsets = [0, 32], sizes = [2, 32], strides = [1, 1]} : vector<2x128xf32> to vector<2x32xf32>
    %196 = vector.extract_strided_slice %193 {offsets = [0, 64], sizes = [2, 32], strides = [1, 1]} : vector<2x128xf32> to vector<2x32xf32>
    %197 = vector.extract_strided_slice %193 {offsets = [0, 96], sizes = [2, 32], strides = [1, 1]} : vector<2x128xf32> to vector<2x32xf32>
    %198 = arith.mulf %195, %185 : vector<2x32xf32>
    %199 = arith.mulf %194, %196 : vector<2x32xf32>
    %200 = arith.addf %198, %199 : vector<2x32xf32>
    %201 = math.tanh %200 : vector<2x32xf32>
    %202 = arith.mulf %197, %201 : vector<2x32xf32>
    %203 = vector.extract_strided_slice %97 {offsets = [0, 0], sizes = [1, 32], strides = [1, 1]} : vector<2x32xf32> to vector<1x32xf32>
    %204 = vector.extract_strided_slice %112 {offsets = [0, 0], sizes = [1, 32], strides = [1, 1]} : vector<2x32xf32> to vector<1x32xf32>
    %205 = vector.extract_strided_slice %127 {offsets = [0, 0], sizes = [1, 32], strides = [1, 1]} : vector<2x32xf32> to vector<1x32xf32>
    %206 = vector.extract_strided_slice %142 {offsets = [0, 0], sizes = [1, 32], strides = [1, 1]} : vector<2x32xf32> to vector<1x32xf32>
    %207 = vector.extract_strided_slice %157 {offsets = [0, 0], sizes = [1, 32], strides = [1, 1]} : vector<2x32xf32> to vector<1x32xf32>
    %208 = vector.extract_strided_slice %172 {offsets = [0, 0], sizes = [1, 32], strides = [1, 1]} : vector<2x32xf32> to vector<1x32xf32>
    %209 = vector.extract_strided_slice %187 {offsets = [0, 0], sizes = [1, 32], strides = [1, 1]} : vector<2x32xf32> to vector<1x32xf32>
    %210 = vector.extract_strided_slice %202 {offsets = [0, 0], sizes = [1, 32], strides = [1, 1]} : vector<2x32xf32> to vector<1x32xf32>
    %211 = vector.extract_strided_slice %97 {offsets = [1, 0], sizes = [1, 32], strides = [1, 1]} : vector<2x32xf32> to vector<1x32xf32>
    %212 = vector.extract_strided_slice %112 {offsets = [1, 0], sizes = [1, 32], strides = [1, 1]} : vector<2x32xf32> to vector<1x32xf32>
    %213 = vector.extract_strided_slice %127 {offsets = [1, 0], sizes = [1, 32], strides = [1, 1]} : vector<2x32xf32> to vector<1x32xf32>
    %214 = vector.extract_strided_slice %142 {offsets = [1, 0], sizes = [1, 32], strides = [1, 1]} : vector<2x32xf32> to vector<1x32xf32>
    %215 = vector.extract_strided_slice %157 {offsets = [1, 0], sizes = [1, 32], strides = [1, 1]} : vector<2x32xf32> to vector<1x32xf32>
    %216 = vector.extract_strided_slice %172 {offsets = [1, 0], sizes = [1, 32], strides = [1, 1]} : vector<2x32xf32> to vector<1x32xf32>
    %217 = vector.extract_strided_slice %187 {offsets = [1, 0], sizes = [1, 32], strides = [1, 1]} : vector<2x32xf32> to vector<1x32xf32>
    %218 = vector.extract_strided_slice %202 {offsets = [1, 0], sizes = [1, 32], strides = [1, 1]} : vector<2x32xf32> to vector<1x32xf32>
    %219 = tpu.concatenate %203, %204, %205, %206, %207, %208, %209, %210, %211, %212, %213, %214, %215, %216, %217, %218 in 0 : vector<1x32xf32>, vector<1x32xf32>, vector<1x32xf32>, vector<1x32xf32>, vector<1x32xf32>, vector<1x32xf32>, vector<1x32xf32>, vector<1x32xf32>, vector<1x32xf32>, vector<1x32xf32>, vector<1x32xf32>, vector<1x32xf32>, vector<1x32xf32>, vector<1x32xf32>, vector<1x32xf32>, vector<1x32xf32> -> vector<16x32xf32>
    %c0_40 = arith.constant 0 : index
    %c0_41 = arith.constant 0 : index
    %220 = vector.load %arg5[%c0_40, %c0_41] : memref<32x128xf32, #tpu.memory_space<vmem>>, vector<32x128xf32>
    %cst_42 = arith.constant dense<0.000000e+00> : vector<16x128xf32>
    %221 = tpu.matmul %219, %220, %cst_42 {dimension_numbers = #tpu.dot_dimension_numbers<[1], [0], [0], [1], [0, 0, 1, 1], [], []>} : vector<16x32xf32>, vector<32x128xf32>, vector<16x128xf32> -> vector<16x128xf32>
    %c0_43 = arith.constant 0 : index
    %c0_44 = arith.constant 0 : index
    %222 = vector.load %arg6[%c0_43, %c0_44] : memref<1x128xf32, #tpu.memory_space<vmem>>, vector<1x128xf32>
    %223 = vector.broadcast %222 : vector<1x128xf32> to vector<16x128xf32>
    %224 = arith.addf %221, %223 : vector<16x128xf32>
    %cst_45 = arith.constant dense<0xFF800000> : vector<16xf32>
    %225 = vector.multi_reduction <maximumf>, %224, %cst_45 [1] : vector<16x128xf32> to vector<16xf32>
    %226 = vector.shape_cast %225 : vector<16xf32> to vector<16x1xf32>
    %227 = vector.broadcast %226 : vector<16x1xf32> to vector<16x128xf32>
    %228 = arith.subf %224, %227 : vector<16x128xf32>
    %229 = math.exp %228 : vector<16x128xf32>
    %cst_46 = arith.constant dense<0.000000e+00> : vector<16xf32>
    %230 = vector.multi_reduction <add>, %229, %cst_46 [1] : vector<16x128xf32> to vector<16xf32>
    %231 = vector.shape_cast %230 : vector<16xf32> to vector<16x1xf32>
    %232 = math.log %231 : vector<16x1xf32>
    %233 = vector.broadcast %232 : vector<16x1xf32> to vector<16x128xf32>
    %234 = arith.subf %228, %233 : vector<16x128xf32>
    %c0_47 = arith.constant 0 : index
    %c0_48 = arith.constant 0 : index
    %235 = vector.load %arg7[%c0_47, %c0_48] : memref<16x128xf32, #tpu.memory_space<vmem>>, vector<16x128xf32>
    tpu.vector_store %arg7[%c0_47, %c0_48], %234 {strides = array<i32>} : memref<16x128xf32, #tpu.memory_space<vmem>>, vector<16x128xf32>,
    return
  }
}

</mosaic_0001>

<bundles_post_ra>
// kernel: tpu_custom_call.1
= control target key start
LH: loop header
LB: loop body
LE: loop exit
PB: predicated region body
PF: predicated region fallthrough
CT: control target
= control target key end

     0   :  { %12 = vsyncpa [#allocation5], 0  ;;  %s1989_s0 = inlined_call_operand.vmem [shape: s32[16], index: 0, kind: input, shape index: {}]   ;;  %s1990_s1 = inlined_call_operand.vmem [shape: f32[40,32], index: 1, kind: input, shape index: {}]   ;;  %s1991_s2 = inlined_call_operand.vmem [shape: f32[32,128], index: 2, kind: input, shape index: {}]   ;;  %s1992_s3 = inlined_call_operand.vmem [shape: f32[32,128], index: 3, kind: input, shape index: {}]   ;;  %s1993_s4 = inlined_call_operand.vmem [shape: f32[1,128], index: 4, kind: input, shape index: {}]   ;;  %s1994_s5 = inlined_call_operand.hbm [shape: f32[32,128], index: 5, kind: input, shape index: {}]   ;;  %s1995_s6 = inlined_call_operand.vmem [shape: f32[1,128], index: 6, kind: input, shape index: {}]   ;;  %s1996_s7 = inlined_call_operand.hbm [shape: f32[16,128], index: 7, kind: output, shape index: {}]  }
   0x1   :  { %13 = vsyncpa [#allocation3], 0 }
   0x2   :  { %14 = vsyncpa [#allocation4], 0  ;;  %s21_s26 = sshll.u32 %s1989_s0, 4  ;;  %s22_s26 = int_to_ptr.vmem [resolvable:$true] %s21_s26 }
   0x3   :  { %s1521_s27 = scalar_lea.vmem %s22_s26, 16  ;;  %p1526_p1 = scmp.lt.s32.totalorder %s22_s26, %s22_s26 }
   0x4   :  { %p1522_p0 = scmp.ne.s32.totalorder %s22_s26, %s1521_s27  ;;  %p1527_p2 = scmp.lt.s32.totalorder %s1521_s27, %s1521_s27 }
   0x6   :  { %p1528_p3 = por %p1527_p2, %p1526_p1 }
   0x8   :  { %p1529_p4 = pnand %p1528_p3, %p1522_p0 }
   0xa   :  { %1532 = shalt.err (!%p1529_p4)
}
   0xb   :  { %s1579_s28 = smov [#allocation2]   ;;  %s1580_s29 = smov [#allocation6]  }
   0xc   :  { %24 = dma.vmem_to_smem %s22_s26, 16, %s1579_s28, [#allocation5]  }
   0xd   :  { %s38_s30 = sshll.u32 %s1580_s29, 4  ;;  %s39_s30 = int_to_ptr.vmem [resolvable:$true] %s38_s30 }
   0xe   :  { %s1541_s8 = scalar_lea.vmem %s39_s30, 512  ;;  %p1546_p6 = scmp.lt.s32.totalorder %s39_s30, %s39_s30 }
   0xf   :  { %p1542_p5 = scmp.ne.s32.totalorder %s39_s30, %s1541_s8  ;;  %p1547_p7 = scmp.lt.s32.totalorder %s1541_s8, %s1541_s8 }
  0x11   :  { %p1548_p8 = por %p1547_p7, %p1546_p6 }
  0x13   :  { %p1549_p9 = pnand %p1548_p8, %p1542_p5 }
  0x15   :  { %1552 = shalt.err (!%p1549_p9)
}
  0x16   :  { %s1581_s0 = smov 128   ;;  %s1582_s9 = smov 8  }
  0x17   :  { %44 = dma.hbm_to_vmem [thread:$0]  %s1994_s5, 512, %s39_s30, [#allocation3], %s1581_s0, %s1581_s0, %s1582_s9  }
  0x18   :  { %1573 = dma.done.wait [#allocation5], 16  }
  0x19   :  { %1574 = vsyncadd [#allocation5], 4294967280 }
  0x1a   :  { %1575 = dma.done.wait [#allocation3], 512  }
  0x1b   :  { %1576 = vsyncadd [#allocation3], 4294966784 }
  0x1c   :  { %53 = sfence }
  0x1d   :  { %v54_v0 = vlaneseq  ;;  %v1583_v1 = vmov 0.0   ;;  %s1639_s12 = sld [smem:[#allocation2]]  ;;  %v64_v3 = vld [vmem:[%s1991_s2 + $0x18] sm:$0xff]  ;;  %v63_v4 = vld [vmem:[%s1991_s2 + $0x10] sm:$0xff]  ;;  %vm1584_vm3 = vmmov 0   ;;  %v1585_v8 = vmov 0.5  }
  0x1e   :  { %1372 = vmatprep.subr.mxu1 %v1583_v1  ;;  %s1642_s13 = sld [smem:[#allocation2 + $0x1]]  ;;  %v72_v5 = vld [vmem:[%s1992_s3 + $0x18] sm:$0xff]  ;;  %v71_v7 = vld [vmem:[%s1992_s3 + $0x10] sm:$0xff]  ;;  %1380 = vmatprep.mubr.msk.f32.mxu1 %vm1584_vm3, %v1583_v1  ;;  %v62_v10 = vld [vmem:[%s1991_s2 + $0x8] sm:$0xff]  ;;  %vm169_vm4 = vcmask 1040384   ;;  %vm171_vm5 = vcmask 1041408  }
  0x1f   :  { %v55_v2 = vand.u32 127, %v54_v0  ;;  %s1650_s17 = sld [smem:[#allocation2 + $0x2]]  ;;  %v70_v11 = vld [vmem:[%s1992_s3 + $0x8] sm:$0xff]  ;;  %v61_v16 = vld [vmem:[%s1991_s2] sm:$0xff]  ;;  %vm173_vm6 = vcmask 1042432   ;;  %vm175_vm7 = vcmask 1043456  }
  0x20   :  { %s1655_s20 = sld [smem:[#allocation2 + $0x3]]  ;;  %v69_v17 = vld [vmem:[%s1992_s3] sm:$0xff]  ;;  %vm177_vm8 = vcmask 1044480   ;;  %vm179_vm9 = vcmask 1045504   ;;  %vm181_vm10 = vcmask 1046528   ;;  %vm196_vm11 = vcmask 261120  }
  0x21   :  { %vm56_vm0 = vcmp.ge.s32.totalorder %v55_v2, 64  ;;  %vm57_vm1 = vcmp.lt.s32.totalorder %v55_v2, 96  ;;  %s1664_s23 = sld [smem:[#allocation2 + $0x4]] }
  0x22   :  { %vm1657_vm2 = vmand %vm56_vm0, %vm57_vm1  ;;  %s1676_s26 = sld [smem:[#allocation2 + $0x5]] }
  0x23   :  { %v1671_v9 = vsel %vm1657_vm2, 1.0, %v1585_v8  ;;  %s80_s8 = scalar_lea.vmem %s1990_s1, %s1639_s12  ;;  %s1690_s10 = sld [smem:[#allocation2 + $0x6]] }
  0x24   :  { %v68_v12 = vmul.f32 %v64_v3, %v1671_v9  ;;  %v67_v13 = vmul.f32 %v63_v4, %v1671_v9  ;;  %v1684_v14 = vmul.f32 %v72_v5, %v1671_v9  ;;  %v1693_v15 = vmul.f32 %v71_v7, %v1671_v9  ;;  %s83_s16 = scalar_lea.vmem %s1990_s1, %s1642_s13  ;;  %s1702_s18 = sld [smem:[#allocation2 + $0x7]]  ;;  %v81_v19 = vld [vmem:[%s80_s8] sm:$0x1] }
  0x25   :  { %v66_v18 = vmul.f32 %v62_v10, %v1671_v9  ;;  %v84_v20 = vld [vmem:[%s83_s16] sm:$0x1]  ;;  %s86_s22 = scalar_lea.vmem %s1990_s1, %s1650_s17  ;;  %v1714_v21 = vmul.f32 %v70_v11, %v1671_v9  ;;  %s1716_s13 = sld [smem:[#allocation2 + $0x8]]  ;;  %v65_v24 = vmul.f32 %v61_v16, %v1671_v9  ;;  %v1734_v27 = vmul.f32 %v69_v17, %v1671_v9 }
  0x26   :  { %1361 = vmatprep.subr.mxu0 %v68_v12  ;;  %1373 = vmatpush3.msra.mxu1 %v1684_v14  ;;  %v87_v22 = vld [vmem:[%s86_s22] sm:$0x1]  ;;  %s89_s25 = scalar_lea.vmem %s1990_s1, %s1655_s20  ;;  %v128_v23 = vrot.slane %v84_v20, 7  ;;  %s1723_s27 = sld [smem:[#allocation2 + $0x9]]  ;;  %v192_v4 = vshrl.u32 %v54_v0, 7 }
  0x27   :  { %1362 = vmatpush3.msra.mxu0 %v68_v12  ;;  %1374 = vmatprep.subr.mxu1 %v1583_v1  ;;  %v90_v25 = vld [vmem:[%s89_s25] sm:$0x1]  ;;  %s92_s29 = scalar_lea.vmem %s1990_s1, %s1664_s23  ;;  %v131_v26 = vrot.slane %v87_v22, 6  ;;  %s1731_s30 = sld [smem:[#allocation2 + $0xa]]  ;;  %v1846_v22 = vsel %vm1657_vm2, 0.0, %v1585_v8 }
  0x28   :  { %1363 = vmatprep.subr.mxu0 %v67_v13  ;;  %1375 = vmatpush3.msra.mxu1 %v1693_v15  ;;  %v93_v28 = vld [vmem:[%s92_s29] sm:$0x1]  ;;  %s95_s11 = scalar_lea.vmem %s1990_s1, %s1676_s26  ;;  %v134_v29 = vrot.slane %v90_v25, 5  ;;  %v170_v30 = vsel %vm169_vm4, %v81_v19, %v128_v23  ;;  %s1742_s23 = sld [smem:[#allocation2 + $0xb]]  ;;  %v193_v12 = vsub.s32 0, %v192_v4 }
  0x29   :  { %1364 = vmatpush3.msra.mxu0 %v67_v13  ;;  %1376 = vmatprep.subr.mxu1 %v1583_v1  ;;  %v96_v31 = vld [vmem:[%s95_s11] sm:$0x1]  ;;  %s98_s5 = scalar_lea.vmem %s1990_s1, %s1690_s10  ;;  %v137_v32 = vrot.slane %v93_v28, 4  ;;  %v172_v33 = vsel %vm171_vm5, %v170_v30, %v131_v26  ;;  %s1750_s26 = sld [smem:[#allocation2 + $0xc]] }
  0x2a   :  { %1365 = vmatprep.subr.mxu0 %v66_v18  ;;  %1377 = vmatpush3.msra.mxu1 %v1714_v21  ;;  %v99_v34 = vld [vmem:[%s98_s5] sm:$0x1]  ;;  %s101_s21 = scalar_lea.vmem %s1990_s1, %s1702_s18  ;;  %v140_v35 = vrot.slane %v96_v31, 3  ;;  %v174_v36 = vsel %vm173_vm6, %v172_v33, %v134_v29  ;;  %s1757_s10 = sld [smem:[#allocation2 + $0xd]] }
  0x2b   :  { %1366 = vmatpush3.msra.mxu0 %v66_v18  ;;  %1378 = vmatprep.subr.mxu1 %v1583_v1  ;;  %v102_v37 = vld [vmem:[%s101_s21] sm:$0x1]  ;;  %v143_v38 = vrot.slane %v99_v34, 2  ;;  %v176_v39 = vsel %vm175_vm7, %v174_v36, %v137_v32  ;;  %s104_s18 = scalar_lea.vmem %s1990_s1, %s1716_s13  ;;  %s1765_s22 = sld [smem:[#allocation2 + $0xe]] }
  0x2c   :  { %1367 = vmatprep.subr.mxu0 %v65_v24  ;;  %1379 = vmatpush3.msra.mxu1 %v1734_v27  ;;  %v146_v40 = vrot.slane %v102_v37, 1  ;;  %v178_v41 = vsel %vm177_vm8, %v176_v39, %v140_v35  ;;  %s107_s25 = scalar_lea.vmem %s1990_s1, %s1723_s27  ;;  %s1773_s17 = sld [smem:[#allocation2 + $0xf]]  ;;  %v105_v43 = vld [vmem:[%s104_s18] sm:$0x1] }
  0x2d   :  { %1368 = vmatpush3.msra.mxu0 %v65_v24  ;;  %1381 = vmatmul.mubr.f32.vlgmr.msra.gmra.mxu1 %v1583_v1  ;;  %v180_v42 = vsel %vm179_vm9, %v178_v41, %v143_v38  ;;  %v108_v44 = vld [vmem:[%s107_s25] sm:$0x1]  ;;  %s110_s29 = scalar_lea.vmem %s1990_s1, %s1731_s30  ;;  %s1587_s18 = smov 32  }
  0x2e   :  { %1383 = vmatprep.subr.mxu0 %v1583_v1  ;;  %1394 = vmatprep.subr.mxu1 %v1583_v1  ;;  %v182_v45 = vsel %vm181_vm10, %v180_v42, %v146_v40  ;;  %v111_v46 = vld [vmem:[%s110_s29] sm:$0x1]  ;;  %s113_s8 = scalar_lea.vmem %s1990_s1, %s1742_s23  ;;  %v149_v47 = vrot.slane %v108_v44, 7 }
  0x2f   :  { %1395 = vmatpush3.msra.mxu1 %v1684_v14  ;;  %1402 = vmatprep.mubr.msk.f32.mxu1 %vm1584_vm3, %v1583_v1  ;;  %v114_v48 = vld [vmem:[%s113_s8] sm:$0x1]  ;;  %s116_s14 = scalar_lea.vmem %s1990_s1, %s1750_s26  ;;  %v152_v49 = vrot.slane %v111_v46, 6 }
  0x30   :  { %1369 = vmatprep.mubr.msk.f32.mxu0 %vm196_vm11, %v182_v45  ;;  %1396 = vmatprep.subr.mxu1 %v1583_v1  ;;  %v117_v50 = vld [vmem:[%s116_s14] sm:$0x1]  ;;  %s119_s5 = scalar_lea.vmem %s1990_s1, %s1757_s10  ;;  %v155_v51 = vrot.slane %v114_v48, 5  ;;  %v183_v52 = vsel %vm169_vm4, %v105_v43, %v149_v47 }
  0x31   :  { %1397 = vmatpush3.msra.mxu1 %v1693_v15  ;;  %v120_v53 = vld [vmem:[%s119_s5] sm:$0x1]  ;;  %s122_s21 = scalar_lea.vmem %s1990_s1, %s1765_s22  ;;  %v158_v54 = vrot.slane %v117_v50, 4  ;;  %v184_v55 = vsel %vm171_vm5, %v183_v52, %v152_v49 }
  0x32   :  { %1398 = vmatprep.subr.mxu1 %v1583_v1  ;;  %v123_v56 = vld [vmem:[%s122_s21] sm:$0x1]  ;;  %s125_s10 = scalar_lea.vmem %s1990_s1, %s1773_s17  ;;  %v161_v57 = vrot.slane %v120_v53, 3  ;;  %v185_v58 = vsel %vm173_vm6, %v184_v55, %v155_v51 }
  0x33   :  { %1399 = vmatpush3.msra.mxu1 %v1714_v21  ;;  %v126_v59 = vld [vmem:[%s125_s10] sm:$0x1]  ;;  %v164_v60 = vrot.slane %v123_v56, 2  ;;  %v186_v61 = vsel %vm175_vm7, %v185_v58, %v158_v54 }
  0x34   :  { %1400 = vmatprep.subr.mxu1 %v1583_v1  ;;  %v167_v62 = vrot.slane %v126_v59, 1  ;;  %v187_v63 = vsel %vm177_vm8, %v186_v61, %v161_v57  ;;  %v77_v7 = vld [vmem:[%s1993_s4] sm:$0x1]  ;;  %s1586_s4 = smov 64  }
  0x35   :  { %1401 = vmatpush3.msra.mxu1 %v1734_v27  ;;  %v188_v2 = vsel %vm179_vm9, %v187_v63, %v164_v60  ;;  %v78_v11 = vmul.f32 %v77_v7, %v1671_v9 }
  0x36   :  { %1416 = vmatprep.subr.mxu1 %v1583_v1  ;;  %v189_v3 = vsel %vm181_vm10, %v188_v2, %v167_v62 }
  0x37   :  { %1370 = vmatmul.mubr.msk.f32.vlgmr.msra.gmra.mxu0 %vm196_vm11, %v189_v3  ;;  %v194_v13 = vrot.slane %v78_v11, %v193_v12 }
  0x38   :  { %1384 = vmatpush3.msra.mxu0 %v1684_v14  ;;  %1391 = vmatprep.mubr.msk.f32.mxu0 %vm1584_vm3, %v1583_v1 }
  0x39   :  { %1385 = vmatprep.subr.mxu0 %v1583_v1 }
  0x3a   :  { %1386 = vmatpush3.msra.mxu0 %v1693_v15 }
  0x3b   :  { %1387 = vmatprep.subr.mxu0 %v1583_v1 }
  0x3c   :  { %1388 = vmatpush3.msra.mxu0 %v1714_v21 }
  0x3d   :  { %1389 = vmatprep.subr.mxu0 %v1583_v1 }
  0x3e   :  { %1390 = vmatpush3.msra.mxu0 %v1734_v27 }
  0x3f   :  { %1405 = vmatprep.subr.mxu0 %v1583_v1 }
  0xed   :  { %v347_v5 = vpop.f32.mrf.mxu1 }
  0xef   :  { %v1382_v10 = vpop.f32.mrf.mxu1 }
  0xf7   :  { %v1371_v16 = vpop.f32.mrf.mxu0 }
  0xf8   :  { %v1838_v17 = vadd.f32 %v1371_v16, %v194_v13 }
  0xf9   :  { %v269_v18 = vpop.f32.mrf.mxu0 }
  0xfa   :  { %v1840_v19 = vadd.f32 %v269_v18, %v194_v13 }
  0xfc   :  { %v351_v20 = vadd.f32 %v347_v5, %v1840_v19 }
  0xfe   :  { %1481 = vtanh.f32 %v351_v20 }
 0x10b   :  { %v1482_v0 = vpop.eup %1481 }
 0x10c   :  { %v353_v23 = vmul.f32 %v1482_v0, %v1671_v9 }
 0x10e   :  { %v354_v24 = vadd.f32 %v353_v23, %v1846_v22 }
 0x110   :  { %357 = vrot.lane.b32.xlu0 %v354_v24, %s1586_s4  ;;  %v355_v28 = vmul.f32 0.0, %v354_v24 }
 0x182   :  { %v358_v25 = vpop.permute.xlu0 %357 }
 0x183   :  { %v360_v26 = vmul.f32 %v358_v25, %v354_v24 }
 0x185   :  { %362 = vrot.lane.b32.xlu0 %v360_v26, %s1587_s18 }
 0x1f7   :  { %v363_v29 = vpop.permute.xlu0 %362 }
 0x1f8   :  { %v365_v30 = vadd.f32 %v363_v29, %v355_v28 }
 0x1fa   :  { %1483 = vtanh.f32 %v365_v30  ;;  %v455_v42 = vrot.slane %v365_v30, 6 }
 0x207   :  { %v1484_v31 = vpop.eup %1483 }
 0x208   :  { %368 = vrot.lane.b32.xlu1 %v1484_v31, %s1586_s4 }
 0x27a   :  { %v369_v6 = vpop.permute.xlu1 %368 }
 0x27b   :  { %v1853_v8 = vmul.f32 %v369_v6, %v354_v24 }
 0x27d   :  { %373 = vrot.lane.b32.xlu1 %v1853_v8, %s1587_s18  ;;  %v1103_v7 = vrot.slane %v1853_v8, 1 }
 0x2ef   :  { %v374_v32 = vpop.permute.xlu1 %373 }
 0x2f0   :  { %1392 = vmatmul.mubr.msk.f32.vlgmr.msra.gmra.mxu0 %vm196_vm11, %v374_v32 }
 0x2f1   :  { %1406 = vmatpush3.msra.mxu0 %v1684_v14  ;;  %1413 = vmatprep.mubr.msk.f32.mxu0 %vm1584_vm3, %v1583_v1 }
 0x2f2   :  { %1407 = vmatprep.subr.mxu0 %v1583_v1 }
 0x2f3   :  { %1408 = vmatpush3.msra.mxu0 %v1693_v15 }
 0x2f4   :  { %1409 = vmatprep.subr.mxu0 %v1583_v1 }
 0x2f5   :  { %1410 = vmatpush3.msra.mxu0 %v1714_v21 }
 0x2f6   :  { %1411 = vmatprep.subr.mxu0 %v1583_v1 }
 0x2f7   :  { %1412 = vmatpush3.msra.mxu0 %v1734_v27 }
 0x2f8   :  { %1427 = vmatprep.subr.mxu0 %v1583_v1 }
 0x3b0   :  { %v443_v33 = vpop.f32.mrf.mxu0 }
 0x3b1   :  { %v448_v34 = vrot.slane %v443_v33, 6 }
 0x3b2   :  { %v1393_v35 = vpop.f32.mrf.mxu0 }
 0x3b3   :  { %v450_v36 = vadd.f32 %v448_v34, %v1840_v19 }
 0x3b5   :  { %1485 = vtanh.f32 %v450_v36 }
 0x3c2   :  { %v1486_v37 = vpop.eup %1485 }
 0x3c3   :  { %v452_v38 = vmul.f32 %v1486_v37, %v1671_v9 }
 0x3c5   :  { %v453_v39 = vadd.f32 %v452_v38, %v1846_v22 }
 0x3c7   :  { %459 = vrot.lane.b32.xlu0 %v453_v39, %s1586_s4  ;;  %v457_v43 = vmul.f32 %v455_v42, %v453_v39 }
 0x439   :  { %v460_v40 = vpop.permute.xlu0 %459 }
 0x43a   :  { %v462_v41 = vmul.f32 %v460_v40, %v453_v39 }
 0x43c   :  { %464 = vrot.lane.b32.xlu1 %v462_v41, %s1587_s18 }
 0x4ae   :  { %v465_v44 = vpop.permute.xlu1 %464 }
 0x4af   :  { %v467_v45 = vadd.f32 %v465_v44, %v457_v43 }
 0x4b1   :  { %1487 = vtanh.f32 %v467_v45  ;;  %v558_v60 = vrot.slane %v467_v45, 6 }
 0x4be   :  { %v1488_v46 = vpop.eup %1487 }
 0x4bf   :  { %470 = vrot.lane.b32.xlu0 %v1488_v46, %s1586_s4 }
 0x531   :  { %v471_v47 = vpop.permute.xlu0 %470 }
 0x532   :  { %v473_v48 = vmul.f32 %v471_v47, %v453_v39 }
 0x534   :  { %v475_v49 = vrot.slane %v473_v48, 2  ;;  %v1088_v3 = vrot.slane %v473_v48, 1 }
 0x536   :  { %476 = vrot.lane.b32.xlu1 %v475_v49, %s1587_s18  ;;  %v1116_v13 = vsel %vm169_vm4, %v1853_v8, %v1088_v3  ;;  %v1123_v16 = vsel %vm169_vm4, %v1103_v7, %v475_v49 }
 0x5a8   :  { %v477_v50 = vpop.permute.xlu1 %476 }
 0x5a9   :  { %1403 = vmatmul.mubr.msk.f32.vlgmr.msra.gmra.mxu1 %vm196_vm11, %v477_v50 }
 0x5aa   :  { %1417 = vmatpush3.msra.mxu1 %v1684_v14  ;;  %1424 = vmatprep.mubr.msk.f32.mxu1 %vm1584_vm3, %v1583_v1 }
 0x5ab   :  { %1418 = vmatprep.subr.mxu1 %v1583_v1 }
 0x5ac   :  { %1419 = vmatpush3.msra.mxu1 %v1693_v15 }
 0x5ad   :  { %1420 = vmatprep.subr.mxu1 %v1583_v1 }
 0x5ae   :  { %1421 = vmatpush3.msra.mxu1 %v1714_v21 }
 0x5af   :  { %1422 = vmatprep.subr.mxu1 %v1583_v1 }
 0x5b0   :  { %1423 = vmatpush3.msra.mxu1 %v1734_v27 }
 0x5b1   :  { %1438 = vmatprep.subr.mxu1 %v1583_v1 }
 0x669   :  { %v546_v51 = vpop.f32.mrf.mxu1 }
 0x66a   :  { %v551_v52 = vrot.slane %v546_v51, 4 }
 0x66b   :  { %v1404_v53 = vpop.f32.mrf.mxu1 }
 0x66c   :  { %v553_v54 = vadd.f32 %v551_v52, %v1840_v19 }
 0x66e   :  { %1489 = vtanh.f32 %v553_v54 }
 0x67b   :  { %v1490_v55 = vpop.eup %1489 }
 0x67c   :  { %v555_v56 = vmul.f32 %v1490_v55, %v1671_v9 }
 0x67e   :  { %v556_v57 = vadd.f32 %v555_v56, %v1846_v22 }
 0x680   :  { %562 = vrot.lane.b32.xlu0 %v556_v57, %s1586_s4  ;;  %v560_v61 = vmul.f32 %v558_v60, %v556_v57 }
 0x6f2   :  { %v563_v58 = vpop.permute.xlu0 %562 }
 0x6f3   :  { %v565_v59 = vmul.f32 %v563_v58, %v556_v57 }
 0x6f5   :  { %567 = vrot.lane.b32.xlu1 %v565_v59, %s1587_s18 }
 0x767   :  { %v568_v62 = vpop.permute.xlu1 %567 }
 0x768   :  { %v570_v63 = vadd.f32 %v568_v62, %v560_v61 }
 0x76a   :  { %1491 = vtanh.f32 %v570_v63  ;;  %v661_v8 = vrot.slane %v570_v63, 6 }
 0x777   :  { %v1492_v2 = vpop.eup %1491 }
 0x778   :  { %573 = vrot.lane.b32.xlu0 %v1492_v2, %s1586_s4 }
 0x7ea   :  { %v574_v4 = vpop.permute.xlu0 %573 }
 0x7eb   :  { %v576_v5 = vmul.f32 %v574_v4, %v556_v57 }
 0x7ed   :  { %v1090_v10 = vrot.slane %v576_v5, 2  ;;  %v1106_v11 = vrot.slane %v576_v5, 3  ;;  %v578_v12 = vrot.slane %v576_v5, 4 }
 0x7ef   :  { %v1117_v18 = vsel %vm171_vm5, %v1116_v13, %v1090_v10  ;;  %v1124_v20 = vsel %vm171_vm5, %v1123_v16, %v1106_v11  ;;  %579 = vrot.lane.b32.xlu1 %v578_v12, %s1587_s18 }
 0x861   :  { %v580_v0 = vpop.permute.xlu1 %579 }
 0x862   :  { %1414 = vmatmul.mubr.msk.f32.vlgmr.msra.gmra.mxu0 %vm196_vm11, %v580_v0 }
 0x863   :  { %1428 = vmatpush3.msra.mxu0 %v1684_v14  ;;  %1435 = vmatprep.mubr.msk.f32.mxu0 %vm1584_vm3, %v1583_v1 }
 0x864   :  { %1429 = vmatprep.subr.mxu0 %v1583_v1 }
 0x865   :  { %1430 = vmatpush3.msra.mxu0 %v1693_v15 }
 0x866   :  { %1431 = vmatprep.subr.mxu0 %v1583_v1 }
 0x867   :  { %1432 = vmatpush3.msra.mxu0 %v1714_v21 }
 0x868   :  { %1433 = vmatprep.subr.mxu0 %v1583_v1 }
 0x869   :  { %1434 = vmatpush3.msra.mxu0 %v1734_v27 }
 0x86a   :  { %1449 = vmatprep.subr.mxu0 %v1583_v1 }
 0x922   :  { %v649_v23 = vpop.f32.mrf.mxu0 }
 0x923   :  { %v654_v24 = vrot.slane %v649_v23, 2 }
 0x924   :  { %v1415_v25 = vpop.f32.mrf.mxu0 }
 0x925   :  { %v656_v26 = vadd.f32 %v654_v24, %v1840_v19 }
 0x927   :  { %1493 = vtanh.f32 %v656_v26 }
 0x934   :  { %v1494_v28 = vpop.eup %1493 }
 0x935   :  { %v658_v29 = vmul.f32 %v1494_v28, %v1671_v9 }
 0x937   :  { %v659_v30 = vadd.f32 %v658_v29, %v1846_v22 }
 0x939   :  { %665 = vrot.lane.b32.xlu0 %v659_v30, %s1586_s4  ;;  %v663_v32 = vmul.f32 %v661_v8, %v659_v30 }
 0x9ab   :  { %v666_v31 = vpop.permute.xlu0 %665 }
 0x9ac   :  { %v668_v6 = vmul.f32 %v666_v31, %v659_v30 }
 0x9ae   :  { %670 = vrot.lane.b32.xlu1 %v668_v6, %s1587_s18 }
 0xa20   :  { %v671_v33 = vpop.permute.xlu1 %670 }
 0xa21   :  { %v673_v34 = vadd.f32 %v671_v33, %v663_v32 }
 0xa23   :  { %1495 = vtanh.f32 %v673_v34  ;;  %v761_v51 = vrot.slane %v673_v34, 6 }
 0xa30   :  { %v1496_v35 = vpop.eup %1495 }
 0xa31   :  { %676 = vrot.lane.b32.xlu0 %v1496_v35, %s1586_s4 }
 0xaa3   :  { %v677_v19 = vpop.permute.xlu0 %676 }
 0xaa4   :  { %v679_v36 = vmul.f32 %v677_v19, %v659_v30 }
 0xaa6   :  { %v1092_v37 = vrot.slane %v679_v36, 3  ;;  %v1108_v38 = vrot.slane %v679_v36, 4  ;;  %v681_v39 = vrot.slane %v679_v36, 6 }
 0xaa8   :  { %v1118_v40 = vsel %vm173_vm6, %v1117_v18, %v1092_v37  ;;  %v1125_v41 = vsel %vm173_vm6, %v1124_v20, %v1108_v38  ;;  %682 = vrot.lane.b32.xlu1 %v681_v39, %s1587_s18 }
 0xb1a   :  { %v683_v42 = vpop.permute.xlu1 %682 }
 0xb1b   :  { %1425 = vmatmul.mubr.msk.f32.vlgmr.msra.gmra.mxu1 %vm196_vm11, %v683_v42 }
 0xb1c   :  { %1439 = vmatpush3.msra.mxu1 %v1684_v14  ;;  %1446 = vmatprep.mubr.msk.f32.mxu1 %vm1584_vm3, %v1583_v1 }
 0xb1d   :  { %1440 = vmatprep.subr.mxu1 %v1583_v1 }
 0xb1e   :  { %1441 = vmatpush3.msra.mxu1 %v1693_v15 }
 0xb1f   :  { %1442 = vmatprep.subr.mxu1 %v1583_v1 }
 0xb20   :  { %1443 = vmatpush3.msra.mxu1 %v1714_v21 }
 0xb21   :  { %1444 = vmatprep.subr.mxu1 %v1583_v1 }
 0xb22   :  { %1445 = vmatpush3.msra.mxu1 %v1734_v27 }
 0xbdb   :  { %v752_v43 = vpop.f32.mrf.mxu1 }
 0xbdc   :  { %v756_v44 = vadd.f32 %v752_v43, %v1838_v17 }
 0xbdd   :  { %v1426_v45 = vpop.f32.mrf.mxu1 }
 0xbde   :  { %1497 = vtanh.f32 %v756_v44 }
 0xbeb   :  { %v1498_v46 = vpop.eup %1497 }
 0xbec   :  { %v758_v47 = vmul.f32 %v1498_v46, %v1671_v9 }
 0xbee   :  { %v759_v48 = vadd.f32 %v758_v47, %v1846_v22 }
 0xbf0   :  { %765 = vrot.lane.b32.xlu0 %v759_v48, %s1586_s4  ;;  %v763_v52 = vmul.f32 %v761_v51, %v759_v48 }
 0xc62   :  { %v766_v49 = vpop.permute.xlu0 %765 }
 0xc63   :  { %v768_v50 = vmul.f32 %v766_v49, %v759_v48 }
 0xc65   :  { %770 = vrot.lane.b32.xlu1 %v768_v50, %s1587_s18 }
 0xcd7   :  { %v771_v53 = vpop.permute.xlu1 %770 }
 0xcd8   :  { %v773_v54 = vadd.f32 %v771_v53, %v763_v52 }
 0xcda   :  { %1499 = vtanh.f32 %v773_v54 }
 0xce7   :  { %v1500_v55 = vpop.eup %1499 }
 0xce8   :  { %776 = vrot.lane.b32.xlu0 %v1500_v55, %s1586_s4 }
 0xd5a   :  { %v777_v56 = vpop.permute.xlu0 %776 }
 0xd5b   :  { %v779_v57 = vmul.f32 %v777_v56, %v759_v48 }
 0xd5d   :  { %v1094_v58 = vrot.slane %v779_v57, 4  ;;  %v1110_v59 = vrot.slane %v779_v57, 5  ;;  %781 = vrot.lane.b32.xlu1 %v779_v57, %s1587_s18 }
 0xd5f   :  { %v1126_v60 = vsel %vm175_vm7, %v1125_v41, %v1110_v59  ;;  %v1119_v61 = vsel %vm175_vm7, %v1118_v40, %v1094_v58  ;;  %v1133_v59 = vld [vmem:[#allocation6 + $0x18] sm:$0xff] }
 0xd60   :  { %1460 = vmatprep.subr.mxu1 %v1133_v59 }
 0xdcf   :  { %v782_v62 = vpop.permute.xlu1 %781 }
 0xdd0   :  { %1436 = vmatmul.mubr.msk.f32.vlgmr.msra.gmra.mxu0 %vm196_vm11, %v782_v62 }
 0xdd1   :  { %1450 = vmatpush3.msra.mxu0 %v1684_v14  ;;  %1457 = vmatprep.mubr.msk.f32.mxu0 %vm1584_vm3, %v1583_v1 }
 0xdd2   :  { %1451 = vmatprep.subr.mxu0 %v1583_v1 }
 0xdd3   :  { %1452 = vmatpush3.msra.mxu0 %v1693_v15 }
 0xdd4   :  { %1453 = vmatprep.subr.mxu0 %v1583_v1 }
 0xdd5   :  { %1454 = vmatpush3.msra.mxu0 %v1714_v21 }
 0xdd6   :  { %1455 = vmatprep.subr.mxu0 %v1583_v1  ;;  %v863_v1 = vrot.slane %v773_v54, 6 }
 0xdd7   :  { %1456 = vmatpush3.msra.mxu0 %v1734_v27 }
 0xe90   :  { %v851_v63 = vpop.f32.mrf.mxu0 }
 0xe91   :  { %v856_v2 = vrot.slane %v851_v63, 6 }
 0xe92   :  { %v1437_v3 = vpop.f32.mrf.mxu0 }
 0xe93   :  { %v858_v14 = vadd.f32 %v856_v2, %v1838_v17 }
 0xe95   :  { %1501 = vtanh.f32 %v858_v14 }
 0xea2   :  { %v1502_v4 = vpop.eup %1501 }
 0xea3   :  { %v860_v5 = vmul.f32 %v1502_v4, %v1671_v9 }
 0xea5   :  { %v861_v7 = vadd.f32 %v860_v5, %v1846_v22  ;;  %v1306_v5 = vld [vmem:[%s1995_s6] ss:$0 sm:$0xff]  ;;  %s1588_s6 = smov [#allocation7]  }
 0xea6   :  { %s1253_s24 = sshll.u32 %s1588_s6, 4  ;;  %s1254_s24 = int_to_ptr.vmem [resolvable:$true] %s1253_s24 }
 0xea7   :  { %867 = vrot.lane.b32.xlu0 %v861_v7, %s1586_s4  ;;  %v865_v21 = vmul.f32 %v863_v1, %v861_v7  ;;  %s1553_s25 = scalar_lea.vmem %s1254_s24, 256  ;;  %p1558_p11 = scmp.lt.s32.totalorder %s1254_s24, %s1254_s24 }
 0xea8   :  { %p1554_p10 = scmp.ne.s32.totalorder %s1254_s24, %s1553_s25  ;;  %p1559_p12 = scmp.lt.s32.totalorder %s1553_s25, %s1553_s25 }
 0xeaa   :  { %p1560_p13 = por %p1559_p12, %p1558_p11 }
 0xeac   :  { %p1561_p0 = pnand %p1560_p13, %p1554_p10 }
 0xf19   :  { %v868_v15 = vpop.permute.xlu0 %867 }
 0xf1a   :  { %v870_v10 = vmul.f32 %v868_v15, %v861_v7 }
 0xf1c   :  { %872 = vrot.lane.b32.xlu1 %v870_v10, %s1587_s18 }
 0xf8e   :  { %v873_v27 = vpop.permute.xlu1 %872 }
 0xf8f   :  { %v875_v11 = vadd.f32 %v873_v27, %v865_v21 }
 0xf91   :  { %1503 = vtanh.f32 %v875_v11  ;;  %v966_v34 = vrot.slane %v875_v11, 6 }
 0xf9e   :  { %v1504_v12 = vpop.eup %1503 }
 0xf9f   :  { %878 = vrot.lane.b32.xlu0 %v1504_v12, %s1586_s4 }
0x1011   :  { %v879_v13 = vpop.permute.xlu0 %878 }
0x1012   :  { %v881_v16 = vmul.f32 %v879_v13, %v861_v7 }
0x1014   :  { %v1096_v18 = vrot.slane %v881_v16, 5  ;;  %v1112_v20 = vrot.slane %v881_v16, 6  ;;  %v883_v0 = vrot.slane %v881_v16, 2 }
0x1016   :  { %884 = vrot.lane.b32.xlu1 %v883_v0, %s1587_s18  ;;  %v1127_v23 = vsel %vm177_vm8, %v1126_v60, %v1112_v20  ;;  %v1120_v24 = vsel %vm177_vm8, %v1119_v61, %v1096_v18  ;;  %v1132_v60 = vld [vmem:[#allocation6 + $0x10] sm:$0xff] }
0x1088   :  { %v885_v25 = vpop.permute.xlu1 %884 }
0x1089   :  { %1447 = vmatmul.mubr.msk.f32.vlgmr.msra.gmra.mxu1 %vm196_vm11, %v885_v25 }
0x108a   :  { %1461 = vmatpush3.msra.mxu1 %v1133_v59 }
0x108b   :  { %1462 = vmatprep.subr.mxu1 %v1132_v60 }
0x108c   :  { %1463 = vmatpush3.msra.mxu1 %v1132_v60 }
0x1149   :  { %v954_v26 = vpop.f32.mrf.mxu1 }
0x114a   :  { %v959_v28 = vrot.slane %v954_v26, 4 }
0x114b   :  { %v1448_v29 = vpop.f32.mrf.mxu1 }
0x114c   :  { %v961_v30 = vadd.f32 %v959_v28, %v1838_v17 }
0x114e   :  { %1505 = vtanh.f32 %v961_v30 }
0x115b   :  { %v1506_v31 = vpop.eup %1505 }
0x115c   :  { %v963_v6 = vmul.f32 %v1506_v31, %v1671_v9 }
0x115e   :  { %v964_v8 = vadd.f32 %v963_v6, %v1846_v22 }
0x1160   :  { %970 = vrot.lane.b32.xlu0 %v964_v8, %s1586_s4  ;;  %v968_v35 = vmul.f32 %v966_v34, %v964_v8 }
0x11d2   :  { %v971_v32 = vpop.permute.xlu0 %970 }
0x11d3   :  { %v973_v33 = vmul.f32 %v971_v32, %v964_v8 }
0x11d5   :  { %975 = vrot.lane.b32.xlu1 %v973_v33, %s1587_s18 }
0x1247   :  { %v976_v19 = vpop.permute.xlu1 %975 }
0x1248   :  { %v978_v36 = vadd.f32 %v976_v19, %v968_v35 }
0x124a   :  { %1507 = vtanh.f32 %v978_v36  ;;  %v1069_v55 = vrot.slane %v978_v36, 6 }
0x1257   :  { %v1508_v37 = vpop.eup %1507 }
0x1258   :  { %981 = vrot.lane.b32.xlu0 %v1508_v37, %s1586_s4 }
0x12ca   :  { %v982_v38 = vpop.permute.xlu0 %981 }
0x12cb   :  { %v984_v39 = vmul.f32 %v982_v38, %v964_v8 }
0x12cd   :  { %v1098_v40 = vrot.slane %v984_v39, 6  ;;  %v1114_v41 = vrot.slane %v984_v39, 7  ;;  %v986_v42 = vrot.slane %v984_v39, 4 }
0x12cf   :  { %987 = vrot.lane.b32.xlu1 %v986_v42, %s1587_s18  ;;  %v1128_v43 = vsel %vm179_vm9, %v1127_v23, %v1114_v41  ;;  %v1121_v44 = vsel %vm179_vm9, %v1120_v24, %v1098_v40 }
0x1341   :  { %v988_v45 = vpop.permute.xlu1 %987 }
0x1342   :  { %1458 = vmatmul.mubr.msk.f32.vlgmr.msra.gmra.mxu0 %vm196_vm11, %v988_v45 }
0x1402   :  { %v1057_v46 = vpop.f32.mrf.mxu0 }
0x1403   :  { %v1062_v47 = vrot.slane %v1057_v46, 2 }
0x1404   :  { %v1459_v48 = vpop.f32.mrf.mxu0 }
0x1405   :  { %v1064_v49 = vadd.f32 %v1062_v47, %v1838_v17  ;;  %v1131_v17 = vld [vmem:[#allocation6 + $0x8] sm:$0xff] }
0x1406   :  { %1464 = vmatprep.subr.mxu1 %v1131_v17 }
0x1407   :  { %1509 = vtanh.f32 %v1064_v49  ;;  %1465 = vmatpush3.msra.mxu1 %v1131_v17 }
0x1414   :  { %v1510_v50 = vpop.eup %1509 }
0x1415   :  { %v1066_v51 = vmul.f32 %v1510_v50, %v1671_v9 }
0x1417   :  { %v1067_v52 = vadd.f32 %v1066_v51, %v1846_v22  ;;  %v1130_v22 = vld [vmem:[#allocation6] sm:$0xff] }
0x1418   :  { %1466 = vmatprep.subr.mxu1 %v1130_v22 }
0x1419   :  { %1073 = vrot.lane.b32.xlu0 %v1067_v52, %s1586_s4  ;;  %v1071_v56 = vmul.f32 %v1069_v55, %v1067_v52  ;;  %1467 = vmatpush3.msra.mxu1 %v1130_v22 }
0x148b   :  { %v1074_v53 = vpop.permute.xlu0 %1073 }
0x148c   :  { %v1076_v54 = vmul.f32 %v1074_v53, %v1067_v52 }
0x148e   :  { %1078 = vrot.lane.b32.xlu1 %v1076_v54, %s1587_s18 }
0x1500   :  { %v1079_v57 = vpop.permute.xlu1 %1078 }
0x1501   :  { %v1081_v58 = vadd.f32 %v1079_v57, %v1071_v56 }
0x1503   :  { %1511 = vtanh.f32 %v1081_v58 }
0x1510   :  { %v1512_v9 = vpop.eup %1511 }
0x1511   :  { %1084 = vrot.lane.b32.xlu0 %v1512_v9, %s1586_s4 }
0x1583   :  { %v1085_v61 = vpop.permute.xlu0 %1084 }
0x1584   :  { %v1087_v62 = vmul.f32 %v1085_v61, %v1067_v52 }
0x1586   :  { %v1101_v63 = vrot.slane %v1087_v62, 7  ;;  %v1129_v2 = vsel %vm181_vm10, %v1128_v43, %v1087_v62 }
0x1587   :  { %1145 = vrot.lane.b32.xlu0 %v1129_v2, %s1587_s18 }
0x1588   :  { %v1122_v3 = vsel %vm181_vm10, %v1121_v44, %v1101_v63 }
0x1589   :  { %1143 = vrot.lane.b32.xlu1 %v1122_v3, %s1587_s18 }
0x15f9   :  { %v1146_v4 = vpop.permute.xlu0 %1145 }
0x15fb   :  { %v1144_v14 = vpop.permute.xlu1 %1143 }
0x15fc   :  { %1468 = vmatprep.mubr.msk.f32.mxu1 %vm196_vm11, %v1144_v14 }
0x15fd   :  { %1469 = vmatmul.mubr.msk.f32.vlgmr.msra.gmra.mxu1 %vm196_vm11, %v1146_v4 }
0x16bd   :  { %v1470_v7 = vpop.f32.mrf.mxu1 }
0x16be   :  { %v1223_v15 = vadd.f32 %v1470_v7, %v1306_v5 }
0x16bf   :  { %v1217_v10 = vpop.f32.mrf.mxu1 }
0x16c0   :  { %v1218_v1 = vadd.f32 %v1306_v5, %v1217_v10  ;;  %1228 = vmax.xlane.f32.xlu0 %v1223_v15 }
0x16c2   :  { %1226 = vmax.xlane.f32.xlu1 %v1218_v1 }
0x1749   :  { %v1229_v21 = vpop.xlane.xlu0 %1228 }
0x174a   :  { %v1231_v27 = vsub.f32 %v1223_v15, %v1229_v21 }
0x174b   :  { %v1227_v11 = vpop.xlane.xlu1 %1226 }
0x174c   :  { %v1234_v12 = vmul.f32 1.442695, %v1231_v27  ;;  %v1230_v13 = vsub.f32 %v1218_v1, %v1227_v11 }
0x174e   :  { %1513 = vpow2.f32 %v1234_v12  ;;  %v1232_v16 = vmul.f32 1.442695, %v1230_v13 }
0x1750   :  { %1515 = vpow2.f32 %v1232_v16 }
0x175b   :  { %v1514_v18 = vpop.eup %1513 }
0x175c   :  { %1238 = vadd.xlane.f32.xlu1 %v1514_v18 }
0x175d   :  { %v1516_v20 = vpop.eup %1515 }
0x175e   :  { %1236 = vadd.xlane.f32.xlu0 %v1516_v20 }
0x17e5   :  { %v1239_v0 = vpop.xlane.xlu1 %1238 }
0x17e6   :  { %1517 = vlog2.f32 %v1239_v0 }
0x17e7   :  { %v1237_v23 = vpop.xlane.xlu0 %1236 }
0x17e8   :  { %1519 = vlog2.f32 %v1237_v23 }
0x17f3   :  { %v1518_v24 = vpop.eup %1517 }
0x17f4   :  { %v1243_v25 = vmul.f32 0.6931472, %v1518_v24 }
0x17f5   :  { %v1520_v26 = vpop.eup %1519 }
0x17f6   :  { %v1241_v28 = vmul.f32 0.6931472, %v1520_v26  ;;  %v1245_v29 = vsub.f32 %v1231_v27, %v1243_v25 }
0x17f8   :  { %v1244_v30 = vsub.f32 %v1230_v13, %v1241_v28  ;;  %1247 = vst [vmem:[#allocation7 + $0x8] sm:$0xff] %v1245_v29 }
0x17fa   :  { %1246 = vst [vmem:[#allocation7] sm:$0xff] %v1244_v30 }
0x17fb   :  { %1564 = shalt.err (!%p1561_p0)
}
0x17fc   :  { %1259 = dma.vmem_to_hbm [thread:$0]  %s1254_s24, 256, %s1996_s7, [#allocation4], %s1581_s0, %s1581_s0, %s1582_s9  }
0x17fd   :  { %1577 = dma.done.wait [#allocation4], 256  }
0x17fe   :  { %1578 = vsyncadd [#allocation4], 4294967040 }
0x17ff   :  { %1263 = vsyncpa [#allocation3], 1 }
0x1800   :  { %1264 = vsyncpa [#allocation4], 1 }
0x1801   :  { %1265 = vsyncpa [#allocation5], 1 }

</bundles_post_ra>
